<compile_context>
chip_gen: v7x
topology: tpu7x:2x2x1
jax: 0.10.0
libtpu: 0.0.40
codegen_flags: <defaults>
</compile_context>

<pallas_src>
from functools import partial

import jax
import jax.numpy as jnp
from jax import lax
from jax.experimental import pallas as pl
from jax.experimental.pallas import tpu as pltpu


def _fcdp_kernel(x_ref, w1_ref, b1_ref, w2_ref, b2_ref, w3_ref, b3_ref,
                 scale_ref, offset_ref, o_ref, *, chunk):
    """One batch tile: x_ref (tb, D) natural layout -> o_ref (A, tb) lane-dense."""
    tb = x_ref.shape[0]

    # Resident weights / biases / rescale constants -- load once per tile.
    w1 = w1_ref[...]          # (H1, D)
    w2 = w2_ref[...]          # (H2, H1)
    w3 = w3_ref[...]          # (A, H2)
    b1 = b1_ref[...]          # (H1, 1)
    b2 = b2_ref[...]          # (H2, 1)
    b3 = b3_ref[...]          # (A, 1)
    scale = scale_ref[...]    # (A, 1)
    offset = offset_ref[...]  # (A, 1)

    def act(x_c):
        # x_c: (C, D) slice of the state tile (batch on sublanes).  Layer 1
        # contracts both operands' minor (feature) dims so the result lands
        # batch-on-lane; everything downstream stays lane-dense on the batch.
        h = lax.dot_general(w1, x_c, (((1,), (1,)), ((), ())),
                            preferred_element_type=jnp.float32)       # (H1, C)
        h = jnp.maximum(h + b1, 0.0)
        h = jnp.dot(w2, h, preferred_element_type=jnp.float32)         # (H2, C)
        h = jnp.maximum(h + b2, 0.0)
        a = jnp.dot(w3, h, preferred_element_type=jnp.float32)         # (A, C)
        a = jnp.tanh(a + b3)
        # rescale [-1, 1] -> [env_min, env_max], folded into scale/offset.
        return a * scale + offset                                      # (A, C)

    # Lane-chunked inner loop: (32, chunk) hidden activations stay in vregs
    # instead of materializing (32, tb) f32 temporaries in VMEM.
    n_full, rem = divmod(tb, chunk)
    if n_full > 0:
        def body(c, carry):
            start = pl.multiple_of(c * chunk, 128)
            o_ref[:, pl.ds(start, chunk)] = act(x_ref[pl.ds(start, chunk), :])
            return carry
        lax.fori_loop(0, n_full, body, 0, unroll=min(2, n_full))
    if rem > 0:  # static remainder (also the whole-tile path for tiny batches)
        start = n_full * chunk
        o_ref[:, pl.ds(start, rem)] = act(x_ref[pl.ds(start, rem), :])


def fcdp_forward(state, params, env_min, env_max, *,
                 tile_b=16384, chunk=256,
                 vmem_limit_bytes=48 * 1024 * 1024,
                 batch_major_output=True):
    """state: (B, D) f32 in its natural layout (no wrapper pad/transpose passes).
    params: w1 (H1, D), b1 (H1, 1), w2 (H2, H1), b2 (H2, 1), w3 (A, H2), b3 (A, 1).
    Returns (B, A) actions rescaled to [env_min, env_max]; pass
    batch_major_output=False to get the kernel-native (A, B) layout and skip
    the final transpose on the hot path."""
    B, D = state.shape
    H1 = params["w1"].shape[0]
    H2 = params["w2"].shape[0]
    A = params["w3"].shape[0]
    assert chunk % 128 == 0

    # ---- batch-tile selection with an explicit VMEM budget -------------------
    # Per batch-row cost of one tile (f32, double-buffered):
    #   input block  (tb, D): lane dim D pads to 128 in VMEM -> 2 * 128 * 4 B
    #   output block (A, tb): sublane dim A pads to 8        -> 2 *   8 * 4 B
    per_row = 2 * 128 * 4 + 2 * 8 * 4
    headroom = 6 << 20                       # weights, pipeline state, small temps
    tb_cap = max(512, ((vmem_limit_bytes - headroom) // per_row) // 512 * 512)
    tb = max(128, (min(tile_b, tb_cap) // 128) * 128)

    if B <= tb:
        if B >= 256:
            # >= 2 grid steps so the "parallel" axis can use both TCs on v7x
            # even when a single tile would cover the whole batch.
            tb = ((-(-B // 2)) + 127) // 128 * 128
        else:
            tb = B                            # one (possibly tiny) tile
    grid = (pl.cdiv(B, tb),)                  # ragged last block: no batch padding

    # Only raise the scoped-VMEM limit when the tile actually needs it.
    est_vmem = per_row * tb + headroom
    vmem_req = vmem_limit_bytes if est_vmem > (16 << 20) else None

    # Fold the output rescale into two broadcast constants.
    scale = ((env_max - env_min) * 0.5).reshape(A, 1).astype(jnp.float32)
    offset = (env_min.reshape(A, 1) + scale).astype(jnp.float32)

    const = lambda shape: pl.BlockSpec(shape, lambda i: (0, 0))  # VMEM-resident

    out = pl.pallas_call(
        partial(_fcdp_kernel, chunk=chunk),
        out_shape=jax.ShapeDtypeStruct((A, B), jnp.float32),
        grid=grid,
        in_specs=[
            pl.BlockSpec((tb, D), lambda i: (i, 0)),   # streamed state tile
            const((H1, D)), const((H1, 1)),
            const((H2, H1)), const((H2, 1)),
            const((A, H2)), const((A, 1)),
            const((A, 1)), const((A, 1)),
        ],
        out_specs=pl.BlockSpec((A, tb), lambda i: (0, i)),       # lane-dense output
        compiler_params=pltpu.CompilerParams(
            dimension_semantics=("parallel",),
            vmem_limit_bytes=vmem_req),
    )(state,
      params["w1"], params["b1"],
      params["w2"], params["b2"],
      params["w3"], params["b3"],
      scale, offset)

    # TODO(synk): hot-path consumers should take the (A, B) layout directly and
    # skip this (small) extra HBM pass.
    return out.T if batch_major_output else out


def init_fcdp_params(key, input_dim, hidden_dims, action_dim):
    """Deterministic init mimicking nn.Linear's uniform(-1/sqrt(fan_in), 1/sqrt(fan_in)).
    Weights stored PyTorch-style as (out_features, in_features); biases as (out, 1)."""
    dims = [input_dim, *hidden_dims, action_dim]
    params = {}
    names = ["1", "2", "3"]
    for n, (din, dout) in zip(names, zip(dims[:-1], dims[1:])):
        key, kw, kb = jax.random.split(key, 3)
        bound = 1.0 / jnp.sqrt(jnp.float32(din))
        params["w" + n] = jax.random.uniform(kw, (dout, din), jnp.float32, -bound, bound)
        params["b" + n] = jax.random.uniform(kb, (dout, 1), jnp.float32, -bound, bound)
    return params


def fcdp_reference(state, params, env_min, env_max):
    """Pure-JAX reference (matches the PyTorch FCDP math)."""
    h = jnp.maximum(state @ params["w1"].T + params["b1"].T, 0.0)
    h = jnp.maximum(h @ params["w2"].T + params["b2"].T, 0.0)
    a = jnp.tanh(h @ params["w3"].T + params["b3"].T)
    nn_min, nn_max = -1.0, 1.0
    return (a - nn_min) * (env_max - env_min) / (nn_max - nn_min) + env_min


if __name__ == "__main__":
    key = jax.random.PRNGKey(0)

    input_dim = 8
    hidden_dims = (32, 32)
    action_dim = 4

    k_params, k_small, k_big = jax.random.split(key, 3)
    params = init_fcdp_params(k_params, input_dim, hidden_dims, action_dim)

    # action_bounds (env_min, env_max)
    env_min = jnp.full((action_dim,), -2.0, dtype=jnp.float32)
    env_max = jnp.full((action_dim,), 2.0, dtype=jnp.float32)

    # Small batch: single tiny tile (exercises the static whole-tile path).
    state = jax.random.normal(k_small, (2, input_dim), dtype=jnp.float32)
    out = jax.block_until_ready(fcdp_forward(state, params, env_min, env_max))
    ref = fcdp_reference(state, params, env_min.reshape(1, -1), env_max.reshape(1, -1))
    assert out.shape == (2, action_dim)
    assert jnp.allclose(out, ref, atol=1e-4, rtol=1e-5), "small-batch mismatch vs reference"

    # Larger ragged batch: exercises the multi-block grid, the in-kernel chunk
    # loop, and the masked (ragged) last block without any batch padding.
    state_big = jax.random.normal(k_big, (300, input_dim), dtype=jnp.float32)
    out_big = jax.block_until_ready(fcdp_forward(state_big, params, env_min, env_max))
    ref_big = fcdp_reference(state_big, params, env_min.reshape(1, -1), env_max.reshape(1, -1))
    assert out_big.shape == (300, action_dim)
    assert jnp.allclose(out_big, ref_big, atol=1e-4, rtol=1e-5), "ragged-batch mismatch vs reference"

    print("KERNEL_OK")
</pallas_src>

<mosaic_0001>
module attributes {stable_mosaic.version = 11 : i64} {
  func.func @_fcdp_kernel(%arg0: i32, %arg1: memref<2x8xf32, #tpu.memory_space<vmem>>, %arg2: memref<32x8xf32, #tpu.memory_space<vmem>>, %arg3: memref<32x1xf32, #tpu.memory_space<vmem>>, %arg4: memref<32x32xf32, #tpu.memory_space<vmem>>, %arg5: memref<32x1xf32, #tpu.memory_space<vmem>>, %arg6: memref<4x32xf32, #tpu.memory_space<vmem>>, %arg7: memref<4x1xf32, #tpu.memory_space<vmem>>, %arg8: memref<4x1xf32, #tpu.memory_space<vmem>>, %arg9: memref<4x1xf32, #tpu.memory_space<vmem>>, %arg10: memref<4x2xf32, #tpu.memory_space<vmem>>) attributes {dimension_semantics = [#tpu.dimension_semantics<parallel>], iteration_bounds = array<i64: 1>, scalar_prefetch = 0 : i64, scratch_operands = 0 : i64, tpu.core_type = #tpu.core_type<tc>, window_params = [{transform_indices = @transform_0, window_bounds = array<i64: 2, 8>}, {pipeline_mode = #tpu.pipeline_mode<synchronous>, transform_indices = @transform_1, window_bounds = array<i64: 32, 8>}, {pipeline_mode = #tpu.pipeline_mode<synchronous>, transform_indices = @transform_2, window_bounds = array<i64: 32, 1>}, {pipeline_mode = #tpu.pipeline_mode<synchronous>, transform_indices = @transform_3, window_bounds = array<i64: 32, 32>}, {pipeline_mode = #tpu.pipeline_mode<synchronous>, transform_indices = @transform_4, window_bounds = array<i64: 32, 1>}, {pipeline_mode = #tpu.pipeline_mode<synchronous>, transform_indices = @transform_5, window_bounds = array<i64: 4, 32>}, {pipeline_mode = #tpu.pipeline_mode<synchronous>, transform_indices = @transform_6, window_bounds = array<i64: 4, 1>}, {pipeline_mode = #tpu.pipeline_mode<synchronous>, transform_indices = @transform_7, window_bounds = array<i64: 4, 1>}, {pipeline_mode = #tpu.pipeline_mode<synchronous>, transform_indices = @transform_8, window_bounds = array<i64: 4, 1>}, {transform_indices = @transform_9, window_bounds = array<i64: 4, 2>}]} {
    %c0 = arith.constant 0 : index
    %c0_0 = arith.constant 0 : index
    %0 = vector.load %arg2[%c0, %c0_0] : memref<32x8xf32, #tpu.memory_space<vmem>>, vector<32x8xf32>
    %c0_1 = arith.constant 0 : index
    %c0_2 = arith.constant 0 : index
    %1 = vector.load %arg4[%c0_1, %c0_2] : memref<32x32xf32, #tpu.memory_space<vmem>>, vector<32x32xf32>
    %c0_3 = arith.constant 0 : index
    %c0_4 = arith.constant 0 : index
    %2 = vector.load %arg6[%c0_3, %c0_4] : memref<4x32xf32, #tpu.memory_space<vmem>>, vector<4x32xf32>
    %c0_5 = arith.constant 0 : index
    %c0_6 = arith.constant 0 : index
    %3 = vector.load %arg3[%c0_5, %c0_6] : memref<32x1xf32, #tpu.memory_space<vmem>>, vector<32x1xf32>
    %c0_7 = arith.constant 0 : index
    %c0_8 = arith.constant 0 : index
    %4 = vector.load %arg5[%c0_7, %c0_8] : memref<32x1xf32, #tpu.memory_space<vmem>>, vector<32x1xf32>
    %c0_9 = arith.constant 0 : index
    %c0_10 = arith.constant 0 : index
    %5 = vector.load %arg7[%c0_9, %c0_10] : memref<4x1xf32, #tpu.memory_space<vmem>>, vector<4x1xf32>
    %c0_11 = arith.constant 0 : index
    %c0_12 = arith.constant 0 : index
    %6 = vector.load %arg8[%c0_11, %c0_12] : memref<4x1xf32, #tpu.memory_space<vmem>>, vector<4x1xf32>
    %c0_13 = arith.constant 0 : index
    %c0_14 = arith.constant 0 : index
    %7 = vector.load %arg9[%c0_13, %c0_14] : memref<4x1xf32, #tpu.memory_space<vmem>>, vector<4x1xf32>
    %c0_15 = arith.constant 0 : index
    %c0_16 = arith.constant 0 : index
    %8 = vector.load %arg1[%c0_15, %c0_16] : memref<2x8xf32, #tpu.memory_space<vmem>>, vector<2x8xf32>
    %cst = arith.constant dense<0.000000e+00> : vector<32x2xf32>
    %9 = tpu.matmul %0, %8, %cst {dimension_numbers = #tpu.dot_dimension_numbers<[1], [1], [0], [0], [0, 0, 1, 0], [], []>} : vector<32x8xf32>, vector<2x8xf32>, vector<32x2xf32> -> vector<32x2xf32>
    %10 = vector.broadcast %3 : vector<32x1xf32> to vector<32x2xf32>
    %11 = arith.addf %9, %10 : vector<32x2xf32>
    %cst_17 = arith.constant 0.000000e+00 : f32
    %12 = vector.broadcast %cst_17 : f32 to vector<32x2xf32>
    %13 = arith.maximumf %11, %12 : vector<32x2xf32>
    %cst_18 = arith.constant dense<0.000000e+00> : vector<32x2xf32>
    %14 = tpu.matmul %1, %13, %cst_18 {dimension_numbers = #tpu.dot_dimension_numbers<[1], [0], [0], [1], [0, 0, 1, 1], [], []>} : vector<32x32xf32>, vector<32x2xf32>, vector<32x2xf32> -> vector<32x2xf32>
    %15 = vector.broadcast %4 : vector<32x1xf32> to vector<32x2xf32>
    %16 = arith.addf %14, %15 : vector<32x2xf32>
    %cst_19 = arith.constant 0.000000e+00 : f32
    %17 = vector.broadcast %cst_19 : f32 to vector<32x2xf32>
    %18 = arith.maximumf %16, %17 : vector<32x2xf32>
    %cst_20 = arith.constant dense<0.000000e+00> : vector<4x2xf32>
    %19 = tpu.matmul %2, %18, %cst_20 {dimension_numbers = #tpu.dot_dimension_numbers<[1], [0], [0], [1], [0, 0, 1, 1], [], []>} : vector<4x32xf32>, vector<32x2xf32>, vector<4x2xf32> -> vector<4x2xf32>
    %20 = vector.broadcast %5 : vector<4x1xf32> to vector<4x2xf32>
    %21 = arith.addf %19, %20 : vector<4x2xf32>
    %22 = math.tanh %21 : vector<4x2xf32>
    %23 = vector.broadcast %6 : vector<4x1xf32> to vector<4x2xf32>
    %24 = arith.mulf %22, %23 : vector<4x2xf32>
    %25 = vector.broadcast %7 : vector<4x1xf32> to vector<4x2xf32>
    %26 = arith.addf %24, %25 : vector<4x2xf32>
    %c0_21 = arith.constant 0 : index
    %c0_22 = arith.constant 0 : index
    %27 = vector.load %arg10[%c0_21, %c0_22] : memref<4x2xf32, #tpu.memory_space<vmem>>, vector<4x2xf32>
    tpu.vector_store %arg10[%c0_21, %c0_22], %26 {strides = array<i32>} : memref<4x2xf32, #tpu.memory_space<vmem>>, vector<4x2xf32>,
    return
  }
  func.func @transform_0(%arg0: i32) -> (i32, i32) {
    %c0_i32 = arith.constant 0 : i32
    %c0_i32_0 = arith.constant 0 : i32
    return %arg0, %c0_i32 : i32, i32
  }
  func.func @transform_1(%arg0: i32) -> (i32, i32) {
    %c0_i32 = arith.constant 0 : i32
    %c0_i32_0 = arith.constant 0 : i32
    %c0_i32_1 = arith.constant 0 : i32
    return %c0_i32, %c0_i32_0 : i32, i32
  }
  func.func @transform_2(%arg0: i32) -> (i32, i32) {
    %c0_i32 = arith.constant 0 : i32
    %c0_i32_0 = arith.constant 0 : i32
    %c0_i32_1 = arith.constant 0 : i32
    return %c0_i32, %c0_i32_0 : i32, i32
  }
  func.func @transform_3(%arg0: i32) -> (i32, i32) {
    %c0_i32 = arith.constant 0 : i32
    %c0_i32_0 = arith.constant 0 : i32
    %c0_i32_1 = arith.constant 0 : i32
    return %c0_i32, %c0_i32_0 : i32, i32
  }
  func.func @transform_4(%arg0: i32) -> (i32, i32) {
    %c0_i32 = arith.constant 0 : i32
    %c0_i32_0 = arith.constant 0 : i32
    %c0_i32_1 = arith.constant 0 : i32
    return %c0_i32, %c0_i32_0 : i32, i32
  }
  func.func @transform_5(%arg0: i32) -> (i32, i32) {
    %c0_i32 = arith.constant 0 : i32
    %c0_i32_0 = arith.constant 0 : i32
    %c0_i32_1 = arith.constant 0 : i32
    return %c0_i32, %c0_i32_0 : i32, i32
  }
  func.func @transform_6(%arg0: i32) -> (i32, i32) {
    %c0_i32 = arith.constant 0 : i32
    %c0_i32_0 = arith.constant 0 : i32
    %c0_i32_1 = arith.constant 0 : i32
    return %c0_i32, %c0_i32_0 : i32, i32
  }
  func.func @transform_7(%arg0: i32) -> (i32, i32) {
    %c0_i32 = arith.constant 0 : i32
    %c0_i32_0 = arith.constant 0 : i32
    %c0_i32_1 = arith.constant 0 : i32
    return %c0_i32, %c0_i32_0 : i32, i32
  }
  func.func @transform_8(%arg0: i32) -> (i32, i32) {
    %c0_i32 = arith.constant 0 : i32
    %c0_i32_0 = arith.constant 0 : i32
    %c0_i32_1 = arith.constant 0 : i32
    return %c0_i32, %c0_i32_0 : i32, i32
  }
  func.func @transform_9(%arg0: i32) -> (i32, i32) {
    %c0_i32 = arith.constant 0 : i32
    %c0_i32_0 = arith.constant 0 : i32
    return %c0_i32, %arg0 : i32, i32
  }
}

</mosaic_0001>

<bundles_post_ra>
// kernel: tpu_custom_call.1
= control target key start
LH: loop header
LB: loop body
LE: loop exit
PB: predicated region body
PF: predicated region fallthrough
CT: control target
= control target key end

     0   :  { %vm73_vm0 = vcmask 64512   ;;  %v480_v2 = vmov 0   ;;  %vm198_vm1 = vcmask 261120   ;;  %v481_v39 = vmov 0.0|0.0   ;;  %s611_s0 = inlined_call_operand.vmem [shape: f32[2,8], index: 0, kind: input, shape index: {}]   ;;  %s612_s1 = inlined_call_operand.vmem [shape: f32[32,8], index: 1, kind: input, shape index: {}]   ;;  %s613_s2 = inlined_call_operand.vmem [shape: f32[32,1], index: 2, kind: input, shape index: {}]   ;;  %s614_s4 = inlined_call_operand.vmem [shape: f32[32,1], index: 4, kind: input, shape index: {}]   ;;  %s615_s6 = inlined_call_operand.vmem [shape: f32[4,1], index: 6, kind: input, shape index: {}]   ;;  %s616_s7 = inlined_call_operand.vmem [shape: f32[4,1], index: 7, kind: input, shape index: {}]   ;;  %s617_s8 = inlined_call_operand.vmem [shape: f32[4,1], index: 8, kind: input, shape index: {}]   ;;  %s618_s3 = inlined_call_operand.vmem [shape: f32[32,32], index: 3, kind: input, shape index: {}]   ;;  %s619_s5 = inlined_call_operand.vmem [shape: f32[4,32], index: 5, kind: input, shape index: {}]   ;;  %s620_s9 = inlined_call_operand.vmem [shape: f32[4,2], index: 9, kind: output, shape index: {}]  }
   0x1   :  { %v52_v0 = vld [vmem:[%s611_s0] sm:$0x3]  ;;  %476 = vset.pattern.permute.xlu0 %v480_v2  ;;  %477 = vset.pattern.permute.xlu1 %v480_v2  ;;  %v33_v4 = vld [vmem:[%s612_s1 + $0x8] sm:$0xff]  ;;  %v43_v5 = vld [vmem:[%s613_s2 + $0x10] sm:$0xff]  ;;  %vm482_vm2 = vmmov 0   ;;  %v483_v40 = vmov 0.0  }
   0x2   :  { %v32_v1 = vld [vmem:[%s612_s1] sm:$0xff]  ;;  %425 = vmatprep.subr.msk.mxu0 %vm73_vm0, %v52_v0  ;;  %v34_v6 = vld [vmem:[%s612_s1 + $0x10] sm:$0xff]  ;;  %v42_v7 = vld [vmem:[%s613_s2 + $0x8] sm:$0xff]  ;;  %65 = vperm.xlu1 %477, %v43_v5   ;;  %vm391_vm3 = vcmask 11264  }
   0x3   :  { %427 = vmatprep.mubr.msk.f32.mxu0 %vm73_vm0, %v32_v1  ;;  %v41_v3 = vld [vmem:[%s613_s2] sm:$0xff]  ;;  %426 = vmatpush3.xpose.msk.msra.mxu0 %vm73_vm0, %v52_v0  ;;  %v44_v8 = vld [vmem:[%s613_s2 + $0x18] sm:$0xff]  ;;  %v46_v11 = vld [vmem:[%s614_s4 + $0x8] sm:$0xff] }
   0x4   :  { %55 = vperm.xlu0 %476, %v41_v3   ;;  %v35_v9 = vld [vmem:[%s612_s1 + $0x18] sm:$0xff]  ;;  %v45_v10 = vld [vmem:[%s614_s4] sm:$0xff]  ;;  %v47_v12 = vld [vmem:[%s614_s4 + $0x10] sm:$0xff]  ;;  %466 = vmatprep.subr.bf16.mxu0 %v481_v39 }
   0x5   :  { %v48_v13 = vld [vmem:[%s614_s4 + $0x18] sm:$0xff]  ;;  %v49_v14 = vld [vmem:[%s615_s6] sm:$0xf]  ;;  %v37_v36 = vld [vmem:[%s618_s3 + $0x8] sm:$0xff] }
   0x6   :  { %428 = vmatmul.mubr.msk.f32.vlgmr.msra.gmra.mrb[0].mxu0 %vm73_vm0, %v33_v4  ;;  %70 = vperm.xlu1 %477, %v44_v8   ;;  %v50_v15 = vld [vmem:[%s616_s7] sm:$0xf]  ;;  %v38_v37 = vld [vmem:[%s618_s3 + $0x10] sm:$0xff]  ;;  %v39_v38 = vld [vmem:[%s618_s3 + $0x18] sm:$0xff] }
   0x7   :  { %430 = vmatprep.mubr.msk.f32.mxu0 %vm73_vm0, %v34_v6  ;;  %v51_v16 = vld [vmem:[%s617_s8] sm:$0xf] }
   0x8   :  { %60 = vperm.xlu0 %476, %v42_v7   ;;  %v36_v17 = vld [vmem:[%s618_s3] sm:$0xff] }
   0x9   :  { %441 = vmatprep.mubr.msk.f32.mxu1 %vm198_vm1, %v36_v17  ;;  %v40_v59 = vld [vmem:[%s619_s5] sm:$0xf] }
   0xa   :  { %431 = vmatmul.mubr.msk.f32.gmra.mrb[2].mxu0 %vm73_vm0, %v35_v9  ;;  %185 = vperm.xlu1 %477, %v46_v11  }
   0xb   :  { %455 = vmatprep.mubr.msk.f32.mxu0 %vm482_vm2, %v483_v40 }
   0xc   :  { %180 = vperm.xlu0 %476, %v45_v10  }
   0xe   :  { %195 = vperm.xlu1 %477, %v48_v13  }
  0x10   :  { %190 = vperm.xlu0 %476, %v47_v12  }
  0x12   :  { %381 = vperm.xlu1 %477, %v50_v15  }
  0x14   :  { %302 = vperm.xlu0 %476, %v49_v14  }
  0x18   :  { %387 = vperm.xlu0 %476, %v51_v16  }
  0x81   :  { %v66_v19 = vpop.permute.xlu1 %65 }
  0x83   :  { %v56_v18 = vpop.permute.xlu0 %55 }
  0x85   :  { %v71_v26 = vpop.permute.xlu1 %70 }
  0x87   :  { %v61_v20 = vpop.permute.xlu0 %60 }
  0x89   :  { %v186_v41 = vpop.permute.xlu1 %185 }
  0x8b   :  { %v181_v42 = vpop.permute.xlu0 %180 }
  0x8d   :  { %v196_v48 = vpop.permute.xlu1 %195 }
  0x8f   :  { %v191_v51 = vpop.permute.xlu0 %190 }
  0x91   :  { %v382_v1 = vpop.permute.xlu1 %381 }
  0x93   :  { %v303_v60 = vpop.permute.xlu0 %302 }
  0x97   :  { %v388_v3 = vpop.permute.xlu0 %387 }
  0xd9   :  { %v429_v21 = vpop.f32.mrb[0].mxu0 }
  0xda   :  { %v161_v22 = vadd.f32 %v429_v21, %v61_v20  ;;  %v155_v23 = vpop.f32.mrb[1].mxu0 }
  0xdb   :  { %v156_v24 = vadd.f32 %v155_v23, %v56_v18 }
  0xdc   :  { %v175_v25 = vmax.f32 %v161_v22, 0.0 }
  0xdd   :  { %v174_v27 = vmax.f32 %v156_v24, 0.0  ;;  %v432_v28 = vpop.f32.mrb[2].mxu0 }
  0xde   :  { %v171_v29 = vadd.f32 %v432_v28, %v71_v26  ;;  %v165_v30 = vpop.f32.mrb[3].mxu0 }
  0xdf   :  { %v166_v31 = vadd.f32 %v165_v30, %v66_v19  ;;  %v458_v32 = vpack.c.bf16 %v175_v25, %v174_v27 }
  0xe0   :  { %v177_v33 = vmax.f32 %v171_v29, 0.0 }
  0xe1   :  { %v176_v34 = vmax.f32 %v166_v31, 0.0  ;;  %459 = vmatprep.subr.bf16.mxu1 %v458_v32 }
  0xe2   :  { %461 = vmatpush3.bf16.msra.mxu1 %v458_v32 }
  0xe3   :  { %v462_v35 = vpack.c.bf16 %v177_v33, %v176_v34 }
  0xe5   :  { %463 = vmatprep.subr.bf16.mxu1 %v462_v35 }
  0xe6   :  { %465 = vmatpush3.bf16.msra.mxu1 %v462_v35 }
  0xe9   :  { %442 = vmatmul.mubr.msk.f32.vlgmr.msra.gmra.mrb[0].mxu1 %vm198_vm1, %v37_v36 }
  0xea   :  { %444 = vmatprep.mubr.msk.f32.mxu1 %vm198_vm1, %v38_v37 }
  0xed   :  { %445 = vmatmul.mubr.msk.f32.gmra.mrb[2].mxu1 %vm198_vm1, %v39_v38 }
 0x1bc   :  { %v443_v43 = vpop.f32.mrb[0].mxu1 }
 0x1bd   :  { %v283_v44 = vadd.f32 %v443_v43, %v186_v41  ;;  %v277_v45 = vpop.f32.mrb[1].mxu1 }
 0x1be   :  { %v278_v46 = vadd.f32 %v277_v45, %v181_v42 }
 0x1bf   :  { %v297_v47 = vmax.f32 %v283_v44, 0.0 }
 0x1c0   :  { %v296_v49 = vmax.f32 %v278_v46, 0.0  ;;  %v446_v50 = vpop.f32.mrb[2].mxu1 }
 0x1c1   :  { %v293_v52 = vadd.f32 %v446_v50, %v196_v48  ;;  %v287_v53 = vpop.f32.mrb[3].mxu1 }
 0x1c2   :  { %v467_v54 = vpack.c.bf16 %v297_v47, %v296_v49  ;;  %v288_v55 = vadd.f32 %v287_v53, %v191_v51 }
 0x1c3   :  { %v299_v56 = vmax.f32 %v293_v52, 0.0 }
 0x1c4   :  { %v298_v57 = vmax.f32 %v288_v55, 0.0  ;;  %468 = vmatpush3.bf16.msra.mxu0 %v467_v54 }
 0x1c5   :  { %469 = vmatprep.subr.bf16.mxu0 %v481_v39 }
 0x1c6   :  { %v470_v58 = vpack.c.bf16 %v299_v56, %v298_v57 }
 0x1c8   :  { %471 = vmatpush3.bf16.msra.mxu0 %v470_v58 }
 0x1cb   :  { %456 = vmatmul.mubr.msk.f32.vlgmr.msra.gmra.mrb[4].mxu0 %vm198_vm1, %v40_v59 }
 0x29e   :  { %v374_v61 = vpop.f32.mrb[4].mxu0 }
 0x29f   :  { %v375_v62 = vadd.f32 %v374_v61, %v303_v60  ;;  %v457_v63 = vpop.f32.mrb[5].mxu0 }
 0x2a1   :  { %478 = vtanh.f32 %v375_v62 }
 0x2ab   :  { %v479_v0 = vpop.eup %478 }
 0x2ac   :  { %v384_v2 = vmul.f32 %v479_v0, %v382_v1 }
 0x2ae   :  { %v390_v4 = vadd.f32 %v388_v3, %v384_v2 }
 0x2b0   :  { %392 = vst.msk [vmem:[%s620_s9] sm:$0xf] %vm391_vm3, %v390_v4 }

</bundles_post_ra>
